<compile_context>
chip_gen: v7x
topology: tpu7x:2x2x1
jax: 0.10.0
libtpu: 0.0.40
codegen_flags: <defaults>
</compile_context>

<pallas_src>
import jax
import jax.numpy as jnp
from jax import lax
from jax.experimental import pallas as pl
from jax.experimental.pallas import tpu as pltpu

# ---------------- model config (small, consistent with module __init__) -----
VOCAB_SIZE = 64
MAX_POS = 16
HIDDEN = 128          # multiple of 128 -> lane-aligned
DROPOUT_PROB = 0.1    # module evaluated in inference mode (dropout = identity)
BATCH = 2
SEQ = 8               # multiple of 8 -> sublane-aligned
LN_EPS = 1e-12


def embeddings_forward(input_ids, tok_table, pos_table, gamma, beta):
    B, S = input_ids.shape
    V, H = tok_table.shape
    N = B * S
    VS = V + S

    # Row tiling: one tile at toy sizes; multiple pipelined / megacore-
    # shardable tiles once N grows.
    tile_n = min(N, 256)
    if N % tile_n != 0:
        tile_n = N  # TODO(synk): pad ragged N instead of falling back to one tile.
    n_tiles = N // tile_n

    def kernel(ids_ref,    # VMEM (tile_n, 1) int32
               table_ref,  # VMEM (V+S, H) f32   stacked [tok_table; pos_table[:S]]
               gb_ref,     # VMEM (2, H) f32     stacked [gamma; beta]
               out_ref):   # VMEM (tile_n, H) f32
        # --- fused token + position gather via one-hot matmul on the MXU ----
        row0 = pl.program_id(0) * tile_n
        row = row0 + lax.broadcasted_iota(jnp.int32, (tile_n, 1), 0)   # global row
        ids = ids_ref[...]                                   # (tile_n, 1), all < V
        pos_col = V + row % S                                # (tile_n, 1), all >= V

        col = lax.broadcasted_iota(jnp.int32, (tile_n, VS), 1)
        onehot = jnp.logical_or(col == ids, col == pos_col).astype(jnp.float32)
        # TODO(synk): out-of-range ids yield a zero embedding row (PyTorch would
        # raise); acceptable divergence for this kernel.
        x = jnp.dot(onehot, table_ref[...],
                    preferred_element_type=jnp.float32,
                    precision=lax.Precision.HIGHEST)         # exact gather

        # --- LayerNorm over hidden dim (eps = 1e-12, two-pass variance) ------
        mean = jnp.mean(x, axis=-1, keepdims=True)           # (tile_n, 1)
        centered = x - mean
        var = jnp.mean(centered * centered, axis=-1, keepdims=True)
        inv_std = lax.rsqrt(var + LN_EPS)                    # EUP slot

        gamma_v = gb_ref[0:1, :]                             # (1, H)
        beta_v = gb_ref[1:2, :]                              # (1, H)
        # TODO(synk): dropout is identity in inference mode; training-mode
        # dropout would use pltpu.prng_seed / pltpu.prng_random_bits here.
        out_ref[...] = ((centered * inv_std) * gamma_v + beta_v).astype(out_ref.dtype)

    ids_2d = input_ids.reshape(N, 1).astype(jnp.int32)
    table = jnp.concatenate([tok_table, pos_table[:S]], axis=0)          # (V+S, H)
    gb = jnp.concatenate([gamma.reshape(1, H), beta.reshape(1, H)], 0)   # (2, H)

    out_flat = pl.pallas_call(
        kernel,
        out_shape=jax.ShapeDtypeStruct((N, H), jnp.float32),
        grid=(n_tiles,),
        in_specs=[
            pl.BlockSpec((tile_n, 1), lambda i: (i, 0)),
            pl.BlockSpec((VS, H), lambda i: (0, 0)),
            pl.BlockSpec((2, H), lambda i: (0, 0)),
        ],
        out_specs=pl.BlockSpec((tile_n, H), lambda i: (i, 0)),
        compiler_params=pltpu.CompilerParams(
            dimension_semantics=("parallel",)),
    )(ids_2d, table, gb)

    return out_flat.reshape(B, S, H)


def embeddings_reference(input_ids, tok_table, pos_table, gamma, beta):
    """Pure-JAX reference replicating the PyTorch forward (eval mode)."""
    S = input_ids.shape[1]
    tok = tok_table[input_ids]                          # (B, S, H)
    pos = pos_table[jnp.arange(S)][None, :, :]          # (1, S, H)
    x = tok + pos
    mean = jnp.mean(x, axis=-1, keepdims=True)
    var = jnp.mean((x - mean) ** 2, axis=-1, keepdims=True)
    y = (x - mean) / jnp.sqrt(var + LN_EPS)
    return y * gamma[0] + beta[0]


if __name__ == "__main__":
    key = jax.random.PRNGKey(0)
    k_tok, k_pos, k_ids = jax.random.split(key, 3)

    # Deterministic "weights" (nn.Embedding default init ~ N(0, 1);
    # LayerNorm weight = ones, bias = zeros).
    tok_table = jax.random.normal(k_tok, (VOCAB_SIZE, HIDDEN), jnp.float32)
    pos_table_full = jax.random.normal(k_pos, (MAX_POS, HIDDEN), jnp.float32)
    gamma = jnp.ones((1, HIDDEN), jnp.float32)
    beta = jnp.zeros((1, HIDDEN), jnp.float32)

    input_ids = jax.random.randint(k_ids, (BATCH, SEQ), 0, VOCAB_SIZE, jnp.int32)

    out = embeddings_forward(input_ids, tok_table, pos_table_full, gamma, beta)
    out = jax.block_until_ready(out)

    ref = embeddings_reference(input_ids, tok_table, pos_table_full, gamma, beta)
    assert out.shape == (BATCH, SEQ, HIDDEN)
    assert jnp.allclose(out, ref, atol=1e-4, rtol=1e-4), "mismatch vs reference"

    print("KERNEL_OK")
</pallas_src>

<mosaic_0001>
module attributes {stable_mosaic.version = 11 : i64} {
  func.func @kernel(%arg0: i32, %arg1: memref<16x1xi32, #tpu.memory_space<vmem>>, %arg2: memref<72x128xf32, #tpu.memory_space<vmem>>, %arg3: memref<2x128xf32, #tpu.memory_space<vmem>>, %arg4: memref<16x128xf32, #tpu.memory_space<vmem>>) attributes {dimension_semantics = [#tpu.dimension_semantics<parallel>], iteration_bounds = array<i64: 1>, scalar_prefetch = 0 : i64, scratch_operands = 0 : i64, tpu.core_type = #tpu.core_type<tc>, window_params = [{transform_indices = @transform_0, window_bounds = array<i64: 16, 1>}, {pipeline_mode = #tpu.pipeline_mode<synchronous>, transform_indices = @transform_1, window_bounds = array<i64: 72, 128>}, {pipeline_mode = #tpu.pipeline_mode<synchronous>, transform_indices = @transform_2, window_bounds = array<i64: 2, 128>}, {transform_indices = @transform_3, window_bounds = array<i64: 16, 128>}]} {
    %c16_i32 = arith.constant 16 : i32
    %0 = arith.muli %arg0, %c16_i32 : i32
    %1 = tpu.iota {dimensions = array<i32: 0>} : vector<16x1xi32>
    %2 = vector.broadcast %0 : i32 to vector<16x1xi32>
    %3 = arith.addi %2, %1 : vector<16x1xi32>
    %c0 = arith.constant 0 : index
    %c0_0 = arith.constant 0 : index
    %4 = vector.load %arg1[%c0, %c0_0] : memref<16x1xi32, #tpu.memory_space<vmem>>, vector<16x1xi32>
    %c8_i32 = arith.constant 8 : i32
    %c0_i32 = arith.constant 0 : i32
    %5 = arith.cmpi eq, %c8_i32, %c0_i32 : i32
    %c1_i32 = arith.constant 1 : i32
    %6 = arith.select %5, %c1_i32, %c8_i32 : i32
    %7 = vector.broadcast %6 : i32 to vector<16x1xi32>
    %8 = arith.remsi %3, %7 : vector<16x1xi32>
    %c0_i32_1 = arith.constant 0 : i32
    %9 = vector.broadcast %c0_i32_1 : i32 to vector<16x1xi32>
    %10 = arith.cmpi ne, %8, %9 : vector<16x1xi32>
    %c0_i32_2 = arith.constant 0 : i32
    %11 = vector.broadcast %c0_i32_2 : i32 to vector<16x1xi32>
    %12 = arith.cmpi slt, %8, %11 : vector<16x1xi32>
    %c0_i32_3 = arith.constant 0 : i32
    %13 = arith.cmpi slt, %6, %c0_i32_3 : i32
    %14 = vector.broadcast %13 : i1 to vector<16x1xi1>
    %15 = vector.broadcast %14 : vector<16x1xi1> to vector<16x1xi1>
    %16 = arith.xori %12, %15 : vector<16x1xi1>
    %17 = arith.andi %16, %10 : vector<16x1xi1>
    %18 = vector.broadcast %6 : i32 to vector<16x1xi32>
    %19 = arith.addi %8, %18 : vector<16x1xi32>
    %20 = arith.select %17, %19, %8 : vector<16x1xi1>, vector<16x1xi32>
    %c64_i32 = arith.constant 64 : i32
    %21 = vector.broadcast %c64_i32 : i32 to vector<16x1xi32>
    %22 = arith.addi %21, %20 : vector<16x1xi32>
    %23 = tpu.iota {dimensions = array<i32: 1>} : vector<16x72xi32>
    %24 = vector.broadcast %4 : vector<16x1xi32> to vector<16x72xi32>
    %25 = arith.cmpi eq, %23, %24 : vector<16x72xi32>
    %26 = vector.broadcast %22 : vector<16x1xi32> to vector<16x72xi32>
    %27 = arith.cmpi eq, %23, %26 : vector<16x72xi32>
    %28 = arith.ori %25, %27 : vector<16x72xi1>
    %29 = arith.extui %28 : vector<16x72xi1> to vector<16x72xi32>
    %30 = arith.sitofp %29 : vector<16x72xi32> to vector<16x72xf32>
    %c0_4 = arith.constant 0 : index
    %c0_5 = arith.constant 0 : index
    %31 = vector.load %arg2[%c0_4, %c0_5] : memref<72x128xf32, #tpu.memory_space<vmem>>, vector<72x128xf32>
    %cst = arith.constant dense<0.000000e+00> : vector<16x128xf32>
    %32 = tpu.matmul %30, %31, %cst {dimension_numbers = #tpu.dot_dimension_numbers<[1], [0], [0], [1], [0, 0, 1, 1], [], []>, precision = #tpu.contract_precision<fp32>} : vector<16x72xf32>, vector<72x128xf32>, vector<16x128xf32> -> vector<16x128xf32>
    %cst_6 = arith.constant dense<0.000000e+00> : vector<16xf32>
    %33 = vector.multi_reduction <add>, %32, %cst_6 [1] : vector<16x128xf32> to vector<16xf32>
    %34 = vector.shape_cast %33 : vector<16xf32> to vector<16x1xf32>
    %cst_7 = arith.constant 1.280000e+02 : f32
    %35 = vector.broadcast %cst_7 : f32 to vector<16x1xf32>
    %36 = arith.divf %34, %35 : vector<16x1xf32>
    %37 = vector.broadcast %36 : vector<16x1xf32> to vector<16x128xf32>
    %38 = arith.subf %32, %37 : vector<16x128xf32>
    %39 = arith.mulf %38, %38 : vector<16x128xf32>
    %cst_8 = arith.constant dense<0.000000e+00> : vector<16xf32>
    %40 = vector.multi_reduction <add>, %39, %cst_8 [1] : vector<16x128xf32> to vector<16xf32>
    %41 = vector.shape_cast %40 : vector<16xf32> to vector<16x1xf32>
    %cst_9 = arith.constant 1.280000e+02 : f32
    %42 = vector.broadcast %cst_9 : f32 to vector<16x1xf32>
    %43 = arith.divf %41, %42 : vector<16x1xf32>
    %cst_10 = arith.constant 9.99999996E-13 : f32
    %44 = vector.broadcast %cst_10 : f32 to vector<16x1xf32>
    %45 = arith.addf %43, %44 : vector<16x1xf32>
    %46 = math.rsqrt %45 : vector<16x1xf32>
    %c0_11 = arith.constant 0 : index
    %c0_12 = arith.constant 0 : index
    %47 = vector.load %arg3[%c0_11, %c0_12] : memref<2x128xf32, #tpu.memory_space<vmem>>, vector<1x128xf32>
    %c1 = arith.constant 1 : index
    %c0_13 = arith.constant 0 : index
    %48 = vector.load %arg3[%c1, %c0_13] : memref<2x128xf32, #tpu.memory_space<vmem>>, vector<1x128xf32>
    %49 = vector.broadcast %46 : vector<16x1xf32> to vector<16x128xf32>
    %50 = arith.mulf %38, %49 : vector<16x128xf32>
    %51 = vector.broadcast %47 : vector<1x128xf32> to vector<16x128xf32>
    %52 = arith.mulf %50, %51 : vector<16x128xf32>
    %53 = vector.broadcast %48 : vector<1x128xf32> to vector<16x128xf32>
    %54 = arith.addf %52, %53 : vector<16x128xf32>
    %c0_14 = arith.constant 0 : index
    %c0_15 = arith.constant 0 : index
    %55 = vector.load %arg4[%c0_14, %c0_15] : memref<16x128xf32, #tpu.memory_space<vmem>>, vector<16x128xf32>
    tpu.vector_store %arg4[%c0_14, %c0_15], %54 {strides = array<i32>} : memref<16x128xf32, #tpu.memory_space<vmem>>, vector<16x128xf32>,
    return
  }
  func.func @transform_0(%arg0: i32) -> (i32, i32) {
    %c0_i32 = arith.constant 0 : i32
    %c0_i32_0 = arith.constant 0 : i32
    return %arg0, %c0_i32 : i32, i32
  }
  func.func @transform_1(%arg0: i32) -> (i32, i32) {
    %c0_i32 = arith.constant 0 : i32
    %c0_i32_0 = arith.constant 0 : i32
    %c0_i32_1 = arith.constant 0 : i32
    return %c0_i32, %c0_i32_0 : i32, i32
  }
  func.func @transform_2(%arg0: i32) -> (i32, i32) {
    %c0_i32 = arith.constant 0 : i32
    %c0_i32_0 = arith.constant 0 : i32
    %c0_i32_1 = arith.constant 0 : i32
    return %c0_i32, %c0_i32_0 : i32, i32
  }
  func.func @transform_3(%arg0: i32) -> (i32, i32) {
    %c0_i32 = arith.constant 0 : i32
    %c0_i32_0 = arith.constant 0 : i32
    return %arg0, %c0_i32 : i32, i32
  }
}

</mosaic_0001>

<bundles_post_ra>
// kernel: tpu_custom_call.1
= control target key start
LH: loop header
LB: loop body
LE: loop exit
PB: predicated region body
PF: predicated region fallthrough
CT: control target
= control target key end

     0   :  { %8 = vsyncpa [#allocation3], 0  ;;  %s1281_s0 = inlined_call_operand.vmem [shape: s32[16,1], index: 0, kind: input, shape index: {}]   ;;  %s1282_s1 = inlined_call_operand.hbm [shape: f32[72,128], index: 1, kind: input, shape index: {}]   ;;  %s1283_s2 = inlined_call_operand.vmem [shape: f32[2,128], index: 2, kind: input, shape index: {}]   ;;  %s1284_s3 = inlined_call_operand.hbm [shape: f32[16,128], index: 3, kind: output, shape index: {}]  }
   0x1   :  { %9 = vsyncpa [#allocation4], 0  ;;  %s1114_s12 = smov [#allocation2]   ;;  %s1066_s16 = scalar_lea.hbm %s1282_s1, 1152 }
   0x2   :  { %s17_s13 = sshll.u32 %s1114_s12, 4  ;;  %p1067_p0 = scmp.ne.s32.totalorder %s1282_s1, %s1066_s16  ;;  %s18_s13 = int_to_ptr.vmem [resolvable:$true] %s17_s13 }
   0x3   :  { %p1070_p1 = scmp.lt.u32.totalorder %s1066_s16, %s1282_s1 }
   0x5   :  { %p1072_p2 = pnand %p1070_p1, %p1067_p0 }
   0x7   :  { %1075 = shalt.err (!%p1072_p2)
}
   0x8   :  { %s1076_s21 = scalar_lea.vmem %s18_s13, 1152  ;;  %p1081_p4 = scmp.lt.s32.totalorder %s18_s13, %s18_s13 }
   0x9   :  { %p1077_p3 = scmp.ne.s32.totalorder %s18_s13, %s1076_s21  ;;  %p1082_p5 = scmp.lt.s32.totalorder %s1076_s21, %s1076_s21 }
   0xb   :  { %p1083_p6 = por %p1082_p5, %p1081_p4 }
   0xd   :  { %p1084_p7 = pnand %p1083_p6, %p1077_p3 }
   0xf   :  { %1087 = shalt.err (!%p1084_p7)
}
  0x10   :  { %s1115_s22 = smov 128   ;;  %s1116_s23 = smov 8  }
  0x11   :  { %23 = dma.hbm_to_vmem [thread:$0]  %s1282_s1, 1152, %s18_s13, [#allocation3], %s1115_s22, %s1115_s22, %s1116_s23  }
  0x12   :  { %1110 = dma.done.wait [#allocation3], 1152  }
  0x13   :  { %1111 = vsyncadd [#allocation3], 4294966144  ;;  %v1117_v0 = vmov 0   ;;  %v36_v1 = vld [vmem:[%s1281_s0] sm:$0xff]  ;;  %v82_v2 = vld [vmem:[#allocation2] sm:$0xff]  ;;  %vm91_vm2 = vcmask 588800  }
  0x14   :  { %1061 = vset.pattern.permute.xlu0 %v1117_v0  ;;  %v83_v3 = vld [vmem:[#allocation2 + $0x8] sm:$0xff]  ;;  %v99_v4 = vand.u32 4294901760, %v82_v2  ;;  %v84_v5 = vld [vmem:[#allocation2 + $0x10] sm:$0xff]  ;;  %v85_v6 = vld [vmem:[#allocation2 + $0x18] sm:$0xff]  ;;  %s1119_s5 = smov [#allocation5]  }
  0x15   :  { %67 = vperm.xlu0 %1061, %v36_v1   ;;  %v37_v7 = vld [vmem:[%s1281_s0 + $0x8] sm:$0xff]  ;;  %v102_v8 = vand.u32 4294901760, %v83_v3  ;;  %v105_v9 = vand.u32 4294901760, %v84_v5  ;;  %v108_v10 = vand.u32 4294901760, %v85_v6  ;;  %v86_v11 = vld [vmem:[#allocation2 + $0x20] sm:$0xff]  ;;  %v87_v12 = vld [vmem:[#allocation2 + $0x28] sm:$0xff] }
  0x16   :  { %v111_v15 = vand.u32 4294901760, %v86_v11  ;;  %v114_v16 = vand.u32 4294901760, %v87_v12  ;;  %v88_v17 = vld [vmem:[#allocation2 + $0x30] sm:$0xff]  ;;  %v89_v18 = vld [vmem:[#allocation2 + $0x38] sm:$0xff]  ;;  %v1167_v19 = vsub.f32 %v82_v2, %v99_v4  ;;  %v1187_v31 = vld [vmem:[#allocation2 + $0x40] sm:$0xff]  ;;  %s735_s6 = sshll.u32 %s1119_s5, 4  ;;  %s736_s6 = int_to_ptr.vmem [resolvable:$true] %s735_s6 }
  0x17   :  { %v1161_v13 = vpack.c.bf16 %v102_v8, %v99_v4  ;;  %v1163_v14 = vpack.c.bf16 %v108_v10, %v105_v9  ;;  %v1169_v20 = vsub.f32 %v83_v3, %v102_v8  ;;  %v117_v21 = vand.u32 4294901760, %v88_v17  ;;  %s1088_s7 = scalar_lea.vmem %s736_s6, 256  ;;  %p1093_p9 = scmp.lt.s32.totalorder %s736_s6, %s736_s6 }
  0x18   :  { %v1175_v22 = vpack.c.bf16 %v114_v16, %v111_v15  ;;  %v120_v23 = vand.u32 4294901760, %v89_v18  ;;  %v195_v24 = vand.u32 4294901760, %v1167_v19  ;;  %v208_v28 = vsub.f32 %v84_v5, %v105_v9  ;;  %p1089_p8 = scmp.ne.s32.totalorder %s736_s6, %s1088_s7  ;;  %p1094_p10 = scmp.lt.s32.totalorder %s1088_s7, %s1088_s7 }
  0x19   :  { %70 = vperm.xlu0 %1061, %v37_v7   ;;  %998 = vmatprep.subr.bf16.mxu0 %v1161_v13  ;;  %v202_v25 = vand.u32 4294901760, %v1169_v20  ;;  %v215_v30 = vsub.f32 %v85_v6, %v108_v10  ;;  %v222_v37 = vsub.f32 %v86_v11, %v111_v15  ;;  %v1194_v38 = vand.u32 4294901760, %v1187_v31 }
  0x1a   :  { %950 = vmatprep.subr.bf16.mxu1 %v1161_v13  ;;  %1000 = vmatpush3.bf16.msra.mxu0 %v1161_v13  ;;  %v196_v26 = vsub.f32 %v1167_v19, %v195_v24  ;;  %v1185_v29 = vpack.c.bf16 %v120_v23, %v117_v21  ;;  %v209_v32 = vand.u32 4294901760, %v208_v28  ;;  %v229_v41 = vsub.f32 %v87_v12, %v114_v16  ;;  %p1095_p11 = por %p1094_p10, %p1093_p9 }
  0x1b   :  { %952 = vmatpush3.bf16.msra.mxu1 %v1161_v13  ;;  %1002 = vmatprep.subr.bf16.mxu0 %v1163_v14  ;;  %v203_v27 = vsub.f32 %v1169_v20, %v202_v25  ;;  %v216_v35 = vand.u32 4294901760, %v215_v30  ;;  %v223_v43 = vand.u32 4294901760, %v222_v37  ;;  %v1198_v44 = vpack.c.bf16 %v202_v25, %v195_v24 }
  0x1c   :  { %954 = vmatprep.subr.bf16.mxu1 %v1163_v14  ;;  %v197_v33 = vand.u32 4294901760, %v196_v26  ;;  %v210_v36 = vsub.f32 %v208_v28, %v209_v32  ;;  %v230_v47 = vand.u32 4294901760, %v229_v41  ;;  %v236_v49 = vsub.f32 %v88_v17, %v117_v21  ;;  %p1096_p12 = pnand %p1095_p11, %p1089_p8 }
  0x1d   :  { %v204_v34 = vand.u32 4294901760, %v203_v27  ;;  %v1196_v39 = vpack.c.bf16 %v216_v35, %v209_v32  ;;  %v217_v40 = vsub.f32 %v215_v30, %v216_v35  ;;  %v224_v48 = vsub.f32 %v222_v37, %v223_v43 }
  0x1e   :  { %1004 = vmatpush3.bf16.msra.mxu0 %v1163_v14  ;;  %v211_v42 = vand.u32 4294901760, %v210_v36  ;;  %v243_v50 = vsub.f32 %v89_v18, %v120_v23  ;;  %v1208_v52 = vpack.c.bf16 %v230_v47, %v223_v43  ;;  %v231_v53 = vsub.f32 %v229_v41, %v230_v47 }
  0x1f   :  { %956 = vmatpush3.bf16.msra.mxu1 %v1163_v14  ;;  %1006 = vmatprep.subr.bf16.mxu0 %v1175_v22  ;;  %v1200_v45 = vpack.c.bf16 %v204_v34, %v197_v33  ;;  %v218_v46 = vand.u32 4294901760, %v217_v40  ;;  %v225_v54 = vand.u32 4294901760, %v224_v48  ;;  %v237_v55 = vand.u32 4294901760, %v236_v49 }
  0x20   :  { %958 = vmatprep.subr.bf16.mxu1 %v1175_v22  ;;  %v244_v56 = vand.u32 4294901760, %v243_v50  ;;  %v232_v57 = vand.u32 4294901760, %v231_v53  ;;  %v1216_v1 = vpack.c.bf16 %v1169_v20, %v1167_v19  ;;  %v1218_v2 = vpack.c.bf16 %v215_v30, %v208_v28  ;;  %v755_v53 = vld [vmem:[%s1283_s2] ss:$0 sm:$0xff] }
  0x21   :  { %v1206_v51 = vpack.c.bf16 %v218_v46, %v211_v42  ;;  %v238_v59 = vsub.f32 %v236_v49, %v237_v55  ;;  %v1220_v3 = vpack.c.bf16 %v229_v41, %v222_v37  ;;  %v1222_v4 = vpack.c.bf16 %v243_v50, %v236_v49 }
  0x22   :  { %1008 = vmatpush3.bf16.msra.mxu0 %v1175_v22  ;;  %v1025_v58 = vpack.c.bf16 %v244_v56, %v237_v55  ;;  %v245_v60 = vsub.f32 %v243_v50, %v244_v56  ;;  %v973_v61 = vpack.c.bf16 %v232_v57, %v225_v54  ;;  %v30_v5 = vlaneseq  ;;  %v756_v55 = vld [vmem:[%s1283_s2 + $0x1] ss:$0 sm:$0xff] }
  0x23   :  { %960 = vmatpush3.bf16.msra.mxu1 %v1175_v22  ;;  %1010 = vmatprep.subr.bf16.mxu0 %v1185_v29  ;;  %v239_v62 = vand.u32 4294901760, %v238_v59  ;;  %v1118_v16 = vmov 0.0   ;;  %v250_v33 = vsub.f32 %v1187_v31, %v1194_v38 }
  0x24   :  { %962 = vmatprep.subr.bf16.mxu1 %v1185_v29  ;;  %v246_v63 = vand.u32 4294901760, %v245_v60  ;;  %v31_v6 = vshrl.u32 %v30_v5, 7  ;;  %v65_v10 = vand.u32 127, %v30_v5 }
  0x25   :  { %v251_v34 = vand.u32 4294901760, %v250_v33 }
  0x26   :  { %1012 = vmatpush3.bf16.msra.mxu0 %v1185_v29  ;;  %v977_v0 = vpack.c.bf16 %v246_v63, %v239_v62  ;;  %v42_v7 = vand.u32 7, %v31_v6  ;;  %v32_v8 = vadd.s32 8, %v31_v6 }
  0x27   :  { %964 = vmatpush3.bf16.msra.mxu1 %v1185_v29  ;;  %902 = vmatprep.subr.mxu0 %v1194_v38  ;;  %v252_v35 = vsub.f32 %v250_v33, %v251_v34 }
  0x28   :  { %839 = vmatprep.subr.mxu1 %v1194_v38  ;;  %v62_v9 = vadd.s32 64, %v42_v7  ;;  %v49_v11 = vand.u32 7, %v32_v8 }
  0x29   :  { %v253_v31 = vand.u32 4294901760, %v252_v35 }
  0x2a   :  { %903 = vmatpush3.msra.mxu0 %v1194_v38  ;;  %vm74_vm0 = vcmp.eq.s32.totalorder %v65_v10, %v62_v9  ;;  %v63_v12 = vadd.s32 64, %v49_v11 }
  0x2b   :  { %840 = vmatpush3.msra.mxu1 %v1194_v38  ;;  %1014 = vmatprep.subr.bf16.mxu0 %v1198_v44 }
  0x2c   :  { %966 = vmatprep.subr.bf16.mxu1 %v1200_v45  ;;  %vm75_vm4 = vcmp.eq.s32.totalorder %v65_v10, %v63_v12 }
  0x94   :  { %v68_v15 = vpop.permute.xlu0 %67 }
  0x95   :  { %vm72_vm1 = vcmp.eq.s32.totalorder %v65_v10, %v68_v15 }
  0x96   :  { %vm76_vm3 = vmor %vm72_vm1, %vm74_vm0 }
  0x97   :  { %v747_v17 = vsel %vm76_vm3, 1.0, %v1118_v16 }
  0x98   :  { %v71_v18 = vpop.permute.xlu0 %70  ;;  %v93_v19 = vsel %vm91_vm2, %v747_v17, 0 }
  0x99   :  { %vm73_vm5 = vcmp.eq.s32.totalorder %v65_v10, %v71_v18  ;;  %v173_v20 = vsub.f32 %v93_v19, %v93_v19 }
  0x9a   :  { %vm77_vm6 = vmor %vm73_vm5, %vm75_vm4 }
  0x9b   :  { %v748_v21 = vsel %vm77_vm6, 1.0, %v1118_v16  ;;  %v174_v23 = vand.u32 4294901760, %v173_v20 }
  0x9c   :  { %v96_v24 = vsel %vm91_vm2, %v748_v21, 0 }
  0x9d   :  { %v183_v25 = vsub.f32 %v96_v24, %v96_v24  ;;  %904 = vmatprep.mubr.f32.mxu0 %v174_v23  ;;  %v175_v26 = vsub.f32 %v173_v20, %v174_v23 }
  0x9f   :  { %v176_v27 = vand.u32 4294901760, %v175_v26  ;;  %v184_v28 = vand.u32 4294901760, %v183_v25 }
  0xa1   :  { %841 = vmatprep.mubr.f32.mxu1 %v176_v27  ;;  %905 = vmatmul.mubr.f32.vlgmr.msra.gmra.mrb[0].mxu0 %v184_v28  ;;  %v185_v30 = vsub.f32 %v183_v25, %v184_v28 }
  0xa2   :  { %1016 = vmatpush3.bf16.msra.mxu0 %v1198_v44  ;;  %925 = vmatprep.mubr.msk.f32.mxu0 %vm91_vm2, %v747_v17 }
  0xa3   :  { %1018 = vmatprep.subr.bf16.mxu0 %v1196_v39  ;;  %v186_v32 = vand.u32 4294901760, %v185_v30 }
  0xa5   :  { %842 = vmatmul.mubr.f32.vlgmr.msra.gmra.mrb[0].mxu1 %v186_v32 }
  0xa6   :  { %968 = vmatpush3.bf16.msra.mxu1 %v1200_v45  ;;  %1020 = vmatpush3.bf16.msra.mxu0 %v1196_v39 }
  0xa7   :  { %862 = vmatprep.mubr.msk.f32.mxu1 %vm91_vm2, %v747_v17  ;;  %970 = vmatprep.subr.bf16.mxu1 %v1206_v51 }
  0xa8   :  { %1022 = vmatprep.subr.bf16.mxu0 %v1208_v52 }
  0xaa   :  { %972 = vmatpush3.bf16.msra.mxu1 %v1206_v51  ;;  %1024 = vmatpush3.bf16.msra.mxu0 %v1208_v52 }
  0xab   :  { %974 = vmatprep.subr.bf16.mxu1 %v973_v61  ;;  %1026 = vmatprep.subr.bf16.mxu0 %v1025_v58 }
  0xae   :  { %976 = vmatpush3.bf16.msra.mxu1 %v973_v61  ;;  %1028 = vmatpush3.bf16.msra.mxu0 %v1025_v58 }
  0xaf   :  { %978 = vmatprep.subr.bf16.mxu1 %v977_v0  ;;  %923 = vmatprep.subr.mxu0 %v251_v34 }
  0xb2   :  { %980 = vmatpush3.bf16.msra.mxu1 %v977_v0  ;;  %924 = vmatpush3.msra.mxu0 %v251_v34 }
  0xb3   :  { %926 = vmatmul.mubr.msk.f32.vlgmr.msra.gmra.mrb[0].mxu0 %vm91_vm2, %v748_v21  ;;  %1030 = vmatprep.subr.bf16.mxu0 %v1161_v13 }
  0xb4   :  { %1032 = vmatpush3.bf16.msra.mxu0 %v1161_v13  ;;  %946 = vmatprep.mubr.msk.f32.mxu0 %vm91_vm2, %v747_v17 }
  0xb5   :  { %860 = vmatprep.subr.mxu1 %v253_v31  ;;  %1034 = vmatprep.subr.bf16.mxu0 %v1163_v14 }
  0xb6   :  { %861 = vmatpush3.msra.mxu1 %v253_v31 }
  0xb7   :  { %863 = vmatmul.mubr.msk.f32.vlgmr.msra.gmra.mrb[0].mxu1 %vm91_vm2, %v748_v21  ;;  %982 = vmatprep.subr.bf16.mxu1 %v1216_v1 }
  0xb8   :  { %984 = vmatpush3.bf16.msra.mxu1 %v1216_v1  ;;  %883 = vmatprep.mubr.f32.mxu1 %v173_v20 }
  0xb9   :  { %1036 = vmatpush3.bf16.msra.mxu0 %v1163_v14  ;;  %986 = vmatprep.subr.bf16.mxu1 %v1218_v2 }
  0xba   :  { %1038 = vmatprep.subr.bf16.mxu0 %v1175_v22 }
  0xbc   :  { %988 = vmatpush3.bf16.msra.mxu1 %v1218_v2 }
  0xbd   :  { %1040 = vmatpush3.bf16.msra.mxu0 %v1175_v22  ;;  %990 = vmatprep.subr.bf16.mxu1 %v1220_v3 }
  0xbe   :  { %1042 = vmatprep.subr.bf16.mxu0 %v1185_v29 }
  0xc0   :  { %992 = vmatpush3.bf16.msra.mxu1 %v1220_v3 }
  0xc1   :  { %1044 = vmatpush3.bf16.msra.mxu0 %v1185_v29  ;;  %994 = vmatprep.subr.bf16.mxu1 %v1222_v4 }
  0xc2   :  { %944 = vmatprep.subr.mxu0 %v1194_v38 }
  0xc4   :  { %996 = vmatpush3.bf16.msra.mxu1 %v1222_v4 }
  0xc5   :  { %945 = vmatpush3.msra.mxu0 %v1194_v38  ;;  %881 = vmatprep.subr.mxu1 %v250_v33 }
  0xc6   :  { %947 = vmatmul.mubr.msk.f32.vlgmr.msra.gmra.mrb[0].mxu0 %vm91_vm2, %v748_v21 }
  0xc8   :  { %882 = vmatpush3.msra.mxu1 %v250_v33 }
  0xc9   :  { %884 = vmatmul.mubr.f32.vlgmr.msra.gmra.mrb[0].mxu1 %v183_v25 }
 0x199   :  { %v948_v13 = vpop.f32.mrb[0].mxu0 }
 0x19a   :  { %v681_v14 = vpop.f32.mrb[1].mxu0 }
 0x19c   :  { %v885_v22 = vpop.f32.mrb[0].mxu1 }
 0x19d   :  { %v1045_v36 = vadd.f32 %v948_v13, %v885_v22  ;;  %v400_v37 = vpop.f32.mrb[1].mxu1 }
 0x19e   :  { %v1046_v39 = vadd.f32 %v681_v14, %v400_v37 }
 0x1a0   :  { %691 = vadd.xlane.f32.xlu1 %v1046_v39 }
 0x1a4   :  { %693 = vadd.xlane.f32.xlu1 %v1045_v36 }
 0x22d   :  { %v692_v29 = vpop.xlane.xlu1 %691 }
 0x22e   :  { %v696_v40 = vmul.f32 0.0078125, %v692_v29 }
 0x230   :  { %v698_v41 = vsub.f32 %v1046_v39, %v696_v40 }
 0x231   :  { %v694_v42 = vpop.xlane.xlu1 %693 }
 0x232   :  { %v697_v43 = vmul.f32 0.0078125, %v694_v42  ;;  %v700_v44 = vmul.f32 %v698_v41, %v698_v41 }
 0x234   :  { %v699_v38 = vsub.f32 %v1045_v36, %v697_v43  ;;  %702 = vadd.xlane.f32.xlu0 %v700_v44 }
 0x236   :  { %v701_v45 = vmul.f32 %v699_v38, %v699_v38 }
 0x238   :  { %704 = vadd.xlane.f32.xlu1 %v701_v45 }
 0x2c1   :  { %v703_v46 = vpop.xlane.xlu0 %702 }
 0x2c2   :  { %v706_v47 = vmul.f32 0.0078125, %v703_v46 }
 0x2c4   :  { %v708_v48 = vadd.f32 1e-12, %v706_v47 }
 0x2c5   :  { %v705_v49 = vpop.xlane.xlu1 %704 }
 0x2c6   :  { %1062 = vrsqrt.f32 %v708_v48  ;;  %v707_v50 = vmul.f32 0.0078125, %v705_v49 }
 0x2c8   :  { %v709_v51 = vadd.f32 1e-12, %v707_v50 }
 0x2ca   :  { %1064 = vrsqrt.f32 %v709_v51 }
 0x2d0   :  { %v1063_v52 = vpop.eup %1062 }
 0x2d1   :  { %v714_v54 = vmul.f32 %v1063_v52, %v698_v41 }
 0x2d3   :  { %v720_v56 = vmul.f32 %v755_v53, %v714_v54 }
 0x2d4   :  { %v1065_v57 = vpop.eup %1064 }
 0x2d5   :  { %v715_v58 = vmul.f32 %v1065_v57, %v699_v38  ;;  %v726_v59 = vadd.f32 %v756_v55, %v720_v56 }
 0x2d7   :  { %v721_v60 = vmul.f32 %v755_v53, %v715_v58  ;;  %728 = vst [vmem:[#allocation5] sm:$0xff] %v726_v59 }
 0x2d9   :  { %v727_v61 = vadd.f32 %v756_v55, %v721_v60 }
 0x2db   :  { %729 = vst [vmem:[#allocation5 + $0x8] sm:$0xff] %v727_v61 }
 0x2dc   :  { %1099 = shalt.err (!%p1096_p12)
}
 0x2dd   :  { %s1100_s9 = scalar_lea.hbm %s1284_s3, 256 }
 0x2de   :  { %p1101_p13 = scmp.ne.s32.totalorder %s1284_s3, %s1100_s9  ;;  %p1104_p0 = scmp.lt.u32.totalorder %s1100_s9, %s1284_s3 }
 0x2e0   :  { %p1106_p1 = pnand %p1104_p0, %p1101_p13 }
 0x2e2   :  { %1109 = shalt.err (!%p1106_p1)
}
 0x2e3   :  { %741 = dma.vmem_to_hbm [thread:$0]  %s736_s6, 256, %s1284_s3, [#allocation4], %s1115_s22, %s1115_s22, %s1116_s23  }
 0x2e4   :  { %1112 = dma.done.wait [#allocation4], 256  }
 0x2e5   :  { %1113 = vsyncadd [#allocation4], 4294967040 }
 0x2e6   :  { %745 = vsyncpa [#allocation3], 1 }
 0x2e7   :  { %746 = vsyncpa [#allocation4], 1 }

</bundles_post_ra>
